<compile_context>
chip_gen: v7x
topology: tpu7x:2x2x1
jax: 0.10.0
libtpu: 0.0.40
codegen_flags: <defaults>
</compile_context>

<pallas_src>
import math
import numpy as np
import jax
import jax.numpy as jnp
from jax.experimental import pallas as pl
from jax.experimental.pallas import tpu as pltpu


def _round_up(a, m):
    return ((a + m - 1) // m) * m


def _make_noenc_kernel(n_hidden_layers):
    """One grid step computes the full NoEnc forward for one lane-tile of points.

    Ref layout (transposed: points on lanes, features on sublanes):
      x_ref : (1, tile)
      params: w0 (H,1), b0 (H,1), [w_i (H,H), b_i (H,1)] * L, w_last (O,H), b_last (O,1)
              (PyTorch [out, in] weight layout is exactly what  W @ hT  needs)
      o_ref : (O, tile)
    """

    def kernel(*refs):
        x_ref = refs[0]
        o_ref = refs[-1]
        params = refs[1:-1]

        # Layer 0: Linear(1, H).  K == 1 => outer-product broadcast; keep it on
        # the VPU in f32 (v5e has no bf16 VPU path) instead of wasting an MXU pass.
        w0 = params[0][...].astype(jnp.float32)           # (H, 1)
        b0 = params[1][...].astype(jnp.float32)           # (H, 1)
        h = w0 * x_ref[...].astype(jnp.float32) + b0      # (H, tile) f32

        idx = 2
        for _ in range(n_hidden_layers):
            w = params[idx][...]                          # (H, H), native dtype
            b = params[idx + 1][...].astype(jnp.float32)  # (H, 1)
            # Feed the MXU in the weights' native dtype, accumulate in f32.
            h = jnp.dot(w, h.astype(w.dtype),
                        preferred_element_type=jnp.float32) + b
            idx += 2

        w = params[idx][...]                              # (O, H)
        b = params[idx + 1][...].astype(jnp.float32)      # (O, 1)
        out = jnp.dot(w, h.astype(w.dtype),
                      preferred_element_type=jnp.float32) + b
        o_ref[...] = out.astype(o_ref.dtype)              # lane-dense store

    return kernel


def noenc_forward(x, params, *, tile_n=16384):
    """Pallas implementation of NoEnc.forward.

    Args:
      x: [..., 1] input (first layer is Linear(1, hidden)).
      params: {"net": [(W [out,in], b [out]), ...],   # Linear(1,H), then L x Linear(H,H)
               "net_last": (W_last [O,H], b_last [O])}   (PyTorch weight layout)
    Returns:
      [..., O]
    """
    assert x.shape[-1] == 1, "NoEnc first layer is Linear(1, hidden)"
    lead_shape = x.shape[:-1]
    n = int(np.prod(lead_shape)) if lead_shape else 1

    net = params["net"]
    w_last, b_last = params["net_last"]
    hidden = net[0][0].shape[0]
    out_feats = w_last.shape[0]
    n_hidden = len(net) - 1

    # Points on the 128-lane axis: (1, Npad) input slab, (O, Npad) output slab.
    n_pad = _round_up(max(n, 1), 128)
    xf = x.reshape(1, n)
    if n_pad != n:
        xf = jnp.pad(xf, ((0, 0), (0, n_pad - n)))

    # Tile: large enough to amortize per-step overhead, small enough to stay far
    # below v7x's 32 MiB scoped-VMEM default, and never so large that the grid
    # collapses to a single step when the input allows >= 2 (v7x: 2 TensorCores).
    half = _round_up(-(-n_pad // 2), 128)
    tile = min(tile_n, max(128, half))
    grid = (pl.cdiv(n_pad, tile),)

    const = lambda i: (0, 0)  # weights/biases: same block every step -> resident
    in_specs = [pl.BlockSpec((1, tile), lambda i: (0, i))]
    inputs = [xf]
    for w, b in net:
        in_specs += [pl.BlockSpec(w.shape, const),
                     pl.BlockSpec((w.shape[0], 1), const)]
        inputs += [w, b.reshape(-1, 1)]
    in_specs += [pl.BlockSpec(w_last.shape, const),
                 pl.BlockSpec((out_feats, 1), const)]
    inputs += [w_last, b_last.reshape(-1, 1)]

    itemsize = jnp.dtype(x.dtype).itemsize
    weight_bytes = sum(int(np.prod(a.shape)) * jnp.dtype(a.dtype).itemsize
                       for a in inputs[1:])
    cost = pl.CostEstimate(
        flops=2 * n * hidden * (1 + hidden * n_hidden + out_feats),
        transcendentals=0,
        bytes_accessed=n * (1 + out_feats) * itemsize + weight_bytes,
    )

    out = pl.pallas_call(
        _make_noenc_kernel(n_hidden),
        out_shape=jax.ShapeDtypeStruct((out_feats, n_pad), x.dtype),
        grid_spec=pltpu.PrefetchScalarGridSpec(
            num_scalar_prefetch=0,
            grid=grid,
            in_specs=in_specs,
            out_specs=pl.BlockSpec((out_feats, tile), lambda i: (0, i)),
        ),
        compiler_params=pltpu.CompilerParams(
            dimension_semantics=("parallel",)),
        cost_estimate=cost,
    )(*inputs)

    # (O, N) slab -> (..., O).  Tiny transpose done by XLA outside the kernel so
    # in-kernel stores stay unmasked full-lane vst.
    return out[:, :n].T.reshape(*lead_shape, out_feats)


def noenc_ref(x, params):
    """Pure-JAX reference mirroring NoEnc.forward (PyTorch x @ W.T + b)."""
    h = x
    for w, b in params["net"]:
        h = h @ w.T + b
    w, b = params["net_last"]
    return h @ w.T + b


if __name__ == "__main__":
    # Module config: NoEnc(in_feats, hidden_feats, n_hidden_layers, out_feats)
    # (the first layer is hard-coded Linear(1, hidden) in the PyTorch module).
    hidden_feats, n_hidden_layers, out_feats = 32, 2, 4

    key = jax.random.PRNGKey(0)
    n_layers = n_hidden_layers + 2
    keys = jax.random.split(key, 2 * n_layers + 1)

    x = jax.random.normal(keys[0], (2, 128, 1), dtype=jnp.float32)  # [..., 1]

    def init_linear(kw, kb, fan_in, fan_out):
        bound = 1.0 / math.sqrt(fan_in)
        w = jax.random.uniform(kw, (fan_out, fan_in), jnp.float32, -bound, bound)
        b = jax.random.uniform(kb, (fan_out,), jnp.float32, -bound, bound)
        return w, b

    ki = 1
    net = []
    fan_in = 1
    for _ in range(n_hidden_layers + 1):
        net.append(init_linear(keys[ki], keys[ki + 1], fan_in, hidden_feats))
        fan_in = hidden_feats
        ki += 2
    net_last = init_linear(keys[ki], keys[ki + 1], hidden_feats, out_feats)

    params = dict(net=net, net_last=net_last)

    out = jax.block_until_ready(noenc_forward(x, params))
    assert out.shape == (2, 128, out_feats), out.shape

    ref = noenc_ref(x, params)
    np.testing.assert_allclose(np.asarray(out), np.asarray(ref),
                               rtol=1e-5, atol=1e-5)

    print("KERNEL_OK")
</pallas_src>

<mosaic_0001>
module attributes {stable_mosaic.version = 11 : i64} {
  func.func @kernel(%arg0: i32, %arg1: memref<1x128xf32, #tpu.memory_space<vmem>>, %arg2: memref<32x1xf32, #tpu.memory_space<vmem>>, %arg3: memref<32x1xf32, #tpu.memory_space<vmem>>, %arg4: memref<32x32xf32, #tpu.memory_space<vmem>>, %arg5: memref<32x1xf32, #tpu.memory_space<vmem>>, %arg6: memref<32x32xf32, #tpu.memory_space<vmem>>, %arg7: memref<32x1xf32, #tpu.memory_space<vmem>>, %arg8: memref<4x32xf32, #tpu.memory_space<vmem>>, %arg9: memref<4x1xf32, #tpu.memory_space<vmem>>, %arg10: memref<4x128xf32, #tpu.memory_space<vmem>>) attributes {dimension_semantics = [#tpu.dimension_semantics<parallel>], iteration_bounds = array<i64: 2>, scalar_prefetch = 0 : i64, scratch_operands = 0 : i64, tpu.core_type = #tpu.core_type<tc>, window_params = [{transform_indices = @transform_0, window_bounds = array<i64: 1, 128>}, {pipeline_mode = #tpu.pipeline_mode<synchronous>, transform_indices = @transform_1, window_bounds = array<i64: 32, 1>}, {pipeline_mode = #tpu.pipeline_mode<synchronous>, transform_indices = @transform_2, window_bounds = array<i64: 32, 1>}, {pipeline_mode = #tpu.pipeline_mode<synchronous>, transform_indices = @transform_3, window_bounds = array<i64: 32, 32>}, {pipeline_mode = #tpu.pipeline_mode<synchronous>, transform_indices = @transform_4, window_bounds = array<i64: 32, 1>}, {pipeline_mode = #tpu.pipeline_mode<synchronous>, transform_indices = @transform_5, window_bounds = array<i64: 32, 32>}, {pipeline_mode = #tpu.pipeline_mode<synchronous>, transform_indices = @transform_6, window_bounds = array<i64: 32, 1>}, {pipeline_mode = #tpu.pipeline_mode<synchronous>, transform_indices = @transform_7, window_bounds = array<i64: 4, 32>}, {pipeline_mode = #tpu.pipeline_mode<synchronous>, transform_indices = @transform_8, window_bounds = array<i64: 4, 1>}, {transform_indices = @transform_9, window_bounds = array<i64: 4, 128>}]} {
    %c0 = arith.constant 0 : index
    %c0_0 = arith.constant 0 : index
    %0 = vector.load %arg2[%c0, %c0_0] : memref<32x1xf32, #tpu.memory_space<vmem>>, vector<32x1xf32>
    %c0_1 = arith.constant 0 : index
    %c0_2 = arith.constant 0 : index
    %1 = vector.load %arg3[%c0_1, %c0_2] : memref<32x1xf32, #tpu.memory_space<vmem>>, vector<32x1xf32>
    %c0_3 = arith.constant 0 : index
    %c0_4 = arith.constant 0 : index
    %2 = vector.load %arg1[%c0_3, %c0_4] : memref<1x128xf32, #tpu.memory_space<vmem>>, vector<1x128xf32>
    %3 = vector.broadcast %0 : vector<32x1xf32> to vector<32x128xf32>
    %4 = vector.broadcast %2 : vector<1x128xf32> to vector<32x128xf32>
    %5 = arith.mulf %3, %4 : vector<32x128xf32>
    %6 = vector.broadcast %1 : vector<32x1xf32> to vector<32x128xf32>
    %7 = arith.addf %5, %6 : vector<32x128xf32>
    %c0_5 = arith.constant 0 : index
    %c0_6 = arith.constant 0 : index
    %8 = vector.load %arg4[%c0_5, %c0_6] : memref<32x32xf32, #tpu.memory_space<vmem>>, vector<32x32xf32>
    %c0_7 = arith.constant 0 : index
    %c0_8 = arith.constant 0 : index
    %9 = vector.load %arg5[%c0_7, %c0_8] : memref<32x1xf32, #tpu.memory_space<vmem>>, vector<32x1xf32>
    %cst = arith.constant dense<0.000000e+00> : vector<32x128xf32>
    %10 = tpu.matmul %8, %7, %cst {dimension_numbers = #tpu.dot_dimension_numbers<[1], [0], [0], [1], [0, 0, 1, 1], [], []>} : vector<32x32xf32>, vector<32x128xf32>, vector<32x128xf32> -> vector<32x128xf32>
    %11 = vector.broadcast %9 : vector<32x1xf32> to vector<32x128xf32>
    %12 = arith.addf %10, %11 : vector<32x128xf32>
    %c0_9 = arith.constant 0 : index
    %c0_10 = arith.constant 0 : index
    %13 = vector.load %arg6[%c0_9, %c0_10] : memref<32x32xf32, #tpu.memory_space<vmem>>, vector<32x32xf32>
    %c0_11 = arith.constant 0 : index
    %c0_12 = arith.constant 0 : index
    %14 = vector.load %arg7[%c0_11, %c0_12] : memref<32x1xf32, #tpu.memory_space<vmem>>, vector<32x1xf32>
    %cst_13 = arith.constant dense<0.000000e+00> : vector<32x128xf32>
    %15 = tpu.matmul %13, %12, %cst_13 {dimension_numbers = #tpu.dot_dimension_numbers<[1], [0], [0], [1], [0, 0, 1, 1], [], []>} : vector<32x32xf32>, vector<32x128xf32>, vector<32x128xf32> -> vector<32x128xf32>
    %16 = vector.broadcast %14 : vector<32x1xf32> to vector<32x128xf32>
    %17 = arith.addf %15, %16 : vector<32x128xf32>
    %c0_14 = arith.constant 0 : index
    %c0_15 = arith.constant 0 : index
    %18 = vector.load %arg8[%c0_14, %c0_15] : memref<4x32xf32, #tpu.memory_space<vmem>>, vector<4x32xf32>
    %c0_16 = arith.constant 0 : index
    %c0_17 = arith.constant 0 : index
    %19 = vector.load %arg9[%c0_16, %c0_17] : memref<4x1xf32, #tpu.memory_space<vmem>>, vector<4x1xf32>
    %cst_18 = arith.constant dense<0.000000e+00> : vector<4x128xf32>
    %20 = tpu.matmul %18, %17, %cst_18 {dimension_numbers = #tpu.dot_dimension_numbers<[1], [0], [0], [1], [0, 0, 1, 1], [], []>} : vector<4x32xf32>, vector<32x128xf32>, vector<4x128xf32> -> vector<4x128xf32>
    %21 = vector.broadcast %19 : vector<4x1xf32> to vector<4x128xf32>
    %22 = arith.addf %20, %21 : vector<4x128xf32>
    %c0_19 = arith.constant 0 : index
    %c0_20 = arith.constant 0 : index
    %23 = vector.load %arg10[%c0_19, %c0_20] : memref<4x128xf32, #tpu.memory_space<vmem>>, vector<4x128xf32>
    tpu.vector_store %arg10[%c0_19, %c0_20], %22 {strides = array<i32>} : memref<4x128xf32, #tpu.memory_space<vmem>>, vector<4x128xf32>,
    return
  }
  func.func @transform_0(%arg0: i32) -> (i32, i32) {
    %c0_i32 = arith.constant 0 : i32
    %c0_i32_0 = arith.constant 0 : i32
    return %c0_i32, %arg0 : i32, i32
  }
  func.func @transform_1(%arg0: i32) -> (i32, i32) {
    %c0_i32 = arith.constant 0 : i32
    %c0_i32_0 = arith.constant 0 : i32
    %c0_i32_1 = arith.constant 0 : i32
    return %c0_i32, %c0_i32_0 : i32, i32
  }
  func.func @transform_2(%arg0: i32) -> (i32, i32) {
    %c0_i32 = arith.constant 0 : i32
    %c0_i32_0 = arith.constant 0 : i32
    %c0_i32_1 = arith.constant 0 : i32
    return %c0_i32, %c0_i32_0 : i32, i32
  }
  func.func @transform_3(%arg0: i32) -> (i32, i32) {
    %c0_i32 = arith.constant 0 : i32
    %c0_i32_0 = arith.constant 0 : i32
    %c0_i32_1 = arith.constant 0 : i32
    return %c0_i32, %c0_i32_0 : i32, i32
  }
  func.func @transform_4(%arg0: i32) -> (i32, i32) {
    %c0_i32 = arith.constant 0 : i32
    %c0_i32_0 = arith.constant 0 : i32
    %c0_i32_1 = arith.constant 0 : i32
    return %c0_i32, %c0_i32_0 : i32, i32
  }
  func.func @transform_5(%arg0: i32) -> (i32, i32) {
    %c0_i32 = arith.constant 0 : i32
    %c0_i32_0 = arith.constant 0 : i32
    %c0_i32_1 = arith.constant 0 : i32
    return %c0_i32, %c0_i32_0 : i32, i32
  }
  func.func @transform_6(%arg0: i32) -> (i32, i32) {
    %c0_i32 = arith.constant 0 : i32
    %c0_i32_0 = arith.constant 0 : i32
    %c0_i32_1 = arith.constant 0 : i32
    return %c0_i32, %c0_i32_0 : i32, i32
  }
  func.func @transform_7(%arg0: i32) -> (i32, i32) {
    %c0_i32 = arith.constant 0 : i32
    %c0_i32_0 = arith.constant 0 : i32
    %c0_i32_1 = arith.constant 0 : i32
    return %c0_i32, %c0_i32_0 : i32, i32
  }
  func.func @transform_8(%arg0: i32) -> (i32, i32) {
    %c0_i32 = arith.constant 0 : i32
    %c0_i32_0 = arith.constant 0 : i32
    %c0_i32_1 = arith.constant 0 : i32
    return %c0_i32, %c0_i32_0 : i32, i32
  }
  func.func @transform_9(%arg0: i32) -> (i32, i32) {
    %c0_i32 = arith.constant 0 : i32
    %c0_i32_0 = arith.constant 0 : i32
    return %c0_i32, %arg0 : i32, i32
  }
}

</mosaic_0001>

<bundles_post_ra>
// kernel: tpu_custom_call.1
= control target key start
LH: loop header
LB: loop body
LE: loop exit
PB: predicated region body
PF: predicated region fallthrough
CT: control target
= control target key end

     0   :  { %14 = vsyncpa [#allocation3], 0  ;;  %s1242_s0 = inlined_call_operand.vmem [shape: f32[1,256], index: 0, kind: input, shape index: {}]   ;;  %s1243_s1 = inlined_call_operand.vmem [shape: f32[32,1], index: 1, kind: input, shape index: {}]   ;;  %s1244_s2 = inlined_call_operand.vmem [shape: f32[32,1], index: 2, kind: input, shape index: {}]   ;;  %s1245_s3 = inlined_call_operand.vmem [shape: f32[32,32], index: 3, kind: input, shape index: {}]   ;;  %s1246_s4 = inlined_call_operand.vmem [shape: f32[32,1], index: 4, kind: input, shape index: {}]   ;;  %s1247_s5 = inlined_call_operand.vmem [shape: f32[32,32], index: 5, kind: input, shape index: {}]   ;;  %s1248_s6 = inlined_call_operand.vmem [shape: f32[32,1], index: 6, kind: input, shape index: {}]   ;;  %s1249_s7 = inlined_call_operand.vmem [shape: f32[4,32], index: 7, kind: input, shape index: {}]   ;;  %s1250_s8 = inlined_call_operand.vmem [shape: f32[4,1], index: 8, kind: input, shape index: {}]   ;;  %s1251_s9 = inlined_call_operand.hbm [shape: f32[4,256], index: 9, kind: output, shape index: {}]  }
   0x1   :  { %16 = vsyncpa [#allocation3 + $0x1], 0  ;;  %s1055_s30 = smov 0   ;;  %s1057_s10 = smov 0  }
   0x2   :  { %s1059_s11 = smov 0   ;;  %s1061_s12 = smov 0  }
   0x3 LB: > { %s1076_s13 = sadd.s32 4294967295, %s998_s12   ;;  %s790_s14 = sadd.s32 4294967294, %s998_s12   ;;  %s998_s12 = sphi %s1061_s12, %s1257_s12   ;;  %s994_s11 = sphi %s1059_s11, %s1256_s11   ;;  %s990_s10 = sphi %s1057_s10, %s1255_s10   ;;  %s986_s30 = sphi %s1055_s30, %s1254_s30  }
   0x4   : > { %s1080_s15 = sadd.s32 1, %s998_s12   ;;  %s223_s16 = sadd.s32 1, %s994_s11 }
   0x5   : > { %s220_s17 = ssub.s32 %s998_s12, %s1080_s15  ;;  %p233_p0 = scmp.ne.s32.totalorder %s994_s11, %s990_s10 }
   0x6   : > { %p221_p1 = scmp.eq.s32.totalorder %s220_s17, 0  ;;  %p234_p2 = scmp.eq.s32.totalorder %s1076_s13, 1 }
   0x7   : > { %p239_p3 = scmp.ne.s32.totalorder %s990_s10, %s986_s30  ;;  %p240_p4 = scmp.eq.s32.totalorder %s790_s14, 1 }
   0x8   : > { %s1091_s18 = scalar_select %p221_p1, %s994_s11, %s223_s16  }
   0x9   : > { %p1093_p5 = por %p234_p2, %p233_p0  ;;  %p1097_p6 = por %p240_p4, %p239_p3 }
   0xa   : > { %p793_p7 = scmp.ge.s32.totalorder %s998_s12, 1  ;;  %p288_p8 = scmp.lt.s32.totalorder %s998_s12, 3 }
   0xc   : > { %p289_p9 = pnand %p793_p7, %p288_p8 }
   0xd   : > { %v329_v0 = vld [vmem:[%s1244_s2] sm:$0xff] (!%p289_p9)  ;;  %v1000_v2 = vmov (!%p289_p9), 0   ;;  %v330_v3 = vld [vmem:[%s1244_s2 + $0x8] sm:$0xff] (!%p289_p9)  ;;  %v328_v5 = vld [vmem:[%s1243_s1 + $0x18] sm:$0xff] (!%p289_p9)  ;;  %vm416_vm0 = vcmask (!%p289_p9), 261120   ;;  %p322_p10 = scmp.lt.s32.totalorder (!%p289_p9), %s1076_s13, 1 }
   0xe   : > { %292 = sbr.rel (%p289_p9) target bundleno = 840 (0x348), region = 56  ;;  %v325_v1 = vld [vmem:[%s1243_s1] sm:$0xff] (!%p289_p9)  ;;  %935 = vset.pattern.permute.xlu1 (!%p289_p9), %v1000_v2  ;;  %934 = vset.pattern.permute.xlu0 (!%p289_p9), %v1000_v2  ;;  %v326_v4 = vld [vmem:[%s1243_s1 + $0x8] sm:$0xff] (!%p289_p9)  ;;  %v327_v6 = vld [vmem:[%s1243_s1 + $0x10] sm:$0xff] (!%p289_p9)  ;;  %v1001_v59 = vmov (!%p289_p9), 0.0|0.0   ;;  %vm1002_vm1 = vmmov (!%p289_p9), 0  }
   0xf   : > { %366 = vperm.xlu1 (!%p289_p9), %935, %v329_v0   ;;  %336 = vperm.xlu0 (!%p289_p9), %934, %v325_v1   ;;  %v332_v7 = vld [vmem:[%s1244_s2 + $0x18] sm:$0xff] (!%p289_p9)  ;;  %v331_v8 = vld [vmem:[%s1244_s2 + $0x10] sm:$0xff] (!%p289_p9)  ;;  %v393_v9 = vld [vmem:[%s1246_s4 + $0x8] sm:$0xff] (!%p289_p9)  ;;  %v1003_v60 = vmov (!%p289_p9), 0.0   ;;  %s319_s29 = sand.u32 (!%p289_p9), 1, %s990_s10   ;;  %s806_s16 = sshll.u32 (!%p289_p9), %s1076_s13, 6 }
  0x10   : > { %v392_v10 = vld [vmem:[%s1246_s4] sm:$0xff] (!%p289_p9)  ;;  %v395_v11 = vld [vmem:[%s1246_s4 + $0x18] sm:$0xff] (!%p289_p9)  ;;  %v394_v12 = vld [vmem:[%s1246_s4 + $0x10] sm:$0xff] (!%p289_p9)  ;;  %s794_s14 = sshll.u32 (!%p289_p9), %s319_s29, 2  ;;  %s721_s25 = scalar_lea.sflag (!%p289_p9), [#allocation3], %s319_s29 }
  0x11   : > { %v388_v13 = vld [vmem:[%s1245_s3] sm:$0xff] (!%p289_p9)  ;;  %v519_v14 = vld [vmem:[%s1248_s6 + $0x8] sm:$0xff] (!%p289_p9)  ;;  %v521_v16 = vld [vmem:[%s1248_s6 + $0x18] sm:$0xff] (!%p289_p9)  ;;  %s321_s17 = scalar_lea.vmem (!%p289_p9), [#allocation2], %s794_s14 }
  0x12   : > { %838 = vmatprep.mubr.msk.f32.mxu0 (!%p289_p9), %vm416_vm0, %v388_v13  ;;  %v518_v15 = vld [vmem:[%s1248_s6] sm:$0xff] (!%p289_p9)  ;;  %v520_v17 = vld [vmem:[%s1248_s6 + $0x10] sm:$0xff] (!%p289_p9)  ;;  %v389_v38 = vld [vmem:[%s1245_s3 + $0x8] sm:$0xff] (!%p289_p9) }
  0x13   : > { %371 = vperm.xlu1 (!%p289_p9), %935, %v330_v3   ;;  %341 = vperm.xlu0 (!%p289_p9), %934, %v326_v4   ;;  %v640_v18 = vld [vmem:[%s1250_s8] sm:$0xf] (!%p289_p9)  ;;  %v390_v39 = vld [vmem:[%s1245_s3 + $0x10] sm:$0xff] (!%p289_p9)  ;;  %v391_v40 = vld [vmem:[%s1245_s3 + $0x18] sm:$0xff] (!%p289_p9) }
  0x14   : > { %v514_v41 = vld [vmem:[%s1247_s5] sm:$0xff] (!%p289_p9)  ;;  %v515_v56 = vld [vmem:[%s1247_s5 + $0x8] sm:$0xff] (!%p289_p9)  ;;  %v516_v57 = vld [vmem:[%s1247_s5 + $0x10] sm:$0xff] (!%p289_p9) }
  0x15   : > { %s323_s21 = scalar_select %p322_p10, %s1076_s13, 1  ;;  %852 = vmatprep.mubr.msk.f32.mxu1 %vm416_vm0, %v514_v41  ;;  %v517_v58 = vld [vmem:[%s1247_s5 + $0x18] sm:$0xff] }
  0x16   : > { %s1004_s13 = smov [#allocation2]  }
  0x17   : > { %351 = vperm.xlu1 %935, %v328_v5   ;;  %346 = vperm.xlu0 %934, %v327_v6   ;;  %s324_s24 = scalar_lea.vmem %s1242_s0, %s323_s21  ;;  %s734_s21 = sshll.u32 %s321_s17, 4  ;;  %s1202_s21 = int_to_ptr.vmem [resolvable:$true] %s734_s21 }
  0x18   : > { %v795_v21 = vld [vmem:[%s324_s24] ss:$0 sm:$0xff]  ;;  %s1200_s24 = scalar_lea.hbm %s1251_s9, %s806_s16  ;;  %s936_s26 = scalar_lea.vmem %s1202_s21, 64 }
  0x19   : > { %p937_p11 = scmp.ne.s32.totalorder %s1202_s21, %s936_s26  ;;  %s940_s27 = sshll.u32 %s1004_s13, 4  ;;  %s941_s27 = int_to_ptr.vmem [resolvable:$false] %s940_s27 }
  0x1a   : > { %s942_s28 = scalar_lea.vmem %s941_s27, 128  ;;  %p943_p0 = scmp.lt.s32.totalorder %s1202_s21, %s941_s27 }
  0x1b   : > { %381 = vperm.xlu1 %935, %v332_v7   ;;  %376 = vperm.xlu0 %934, %v331_v8   ;;  %p938_p12 = pnand %p937_p11, %p1093_p5  ;;  %p944_p1 = scmp.lt.s32.totalorder %s942_s28, %s936_s26 }
  0x1d   : > { %p939_p13 = pneg %p938_p12  ;;  %p945_p2 = por %p944_p1, %p943_p0 }
  0x1f   : > { %403 = vperm.xlu1 %935, %v393_v9   ;;  %398 = vperm.xlu0 %934, %v392_v10   ;;  %p946_p3 = pnand %p945_p2, %p939_p13 }
  0x23   : > { %413 = vperm.xlu1 %935, %v395_v11   ;;  %408 = vperm.xlu0 %934, %v394_v12   ;;  %v639_v11 = vld [vmem:[%s1249_s7] sm:$0xf] }
  0x27   : > { %529 = vperm.xlu1 %935, %v519_v14   ;;  %524 = vperm.xlu0 %934, %v518_v15  }
  0x2b   : > { %539 = vperm.xlu1 %935, %v521_v16   ;;  %534 = vperm.xlu0 %934, %v520_v17  }
  0x2f   : > { %643 = vperm.xlu0 %934, %v640_v18  }
  0x8e   : > { %v367_v19 = vpop.permute.xlu1 %366  ;;  %v337_v20 = vpop.permute.xlu0 %336 }
  0x8f   : > { %v360_v22 = vmul.f32 %v795_v21, %v337_v20 }
  0x91   : > { %v384_v26 = vadd.f32 %v367_v19, %v360_v22 }
  0x92   : > { %v372_v23 = vpop.permute.xlu1 %371  ;;  %v342_v24 = vpop.permute.xlu0 %341 }
  0x93   : > { %v361_v25 = vmul.f32 %v795_v21, %v342_v24 }
  0x95   : > { %v385_v27 = vadd.f32 %v372_v23, %v361_v25 }
  0x96   : > { %v352_v28 = vpop.permute.xlu1 %351  ;;  %v347_v29 = vpop.permute.xlu0 %346 }
  0x97   : > { %v869_v30 = vpack.c.bf16 %v385_v27, %v384_v26  ;;  %v363_v31 = vmul.f32 %v795_v21, %v352_v28  ;;  %v362_v32 = vmul.f32 %v795_v21, %v347_v29 }
  0x99   : > { %870 = vmatprep.subr.bf16.mxu0 %v869_v30 }
  0x9a   : > { %v382_v33 = vpop.permute.xlu1 %381  ;;  %v377_v34 = vpop.permute.xlu0 %376  ;;  %872 = vmatpush3.bf16.msra.mxu0 %v869_v30 }
  0x9b   : > { %v387_v35 = vadd.f32 %v382_v33, %v363_v31  ;;  %v386_v36 = vadd.f32 %v377_v34, %v362_v32 }
  0x9d   : > { %v873_v37 = vpack.c.bf16 %v387_v35, %v386_v36 }
  0x9e   : > { %v404_v42 = vpop.permute.xlu1 %403  ;;  %v399_v43 = vpop.permute.xlu0 %398 }
  0x9f   : > { %874 = vmatprep.subr.bf16.mxu0 %v873_v37 }
  0xa0   : > { %876 = vmatpush3.bf16.msra.mxu0 %v873_v37 }
  0xa1   : > { %885 = vmatprep.subr.bf16.mxu0 %v1001_v59 }
  0xa2   : > { %v414_v48 = vpop.permute.xlu1 %413  ;;  %v409_v51 = vpop.permute.xlu0 %408 }
  0xa3   : > { %839 = vmatmul.mubr.msk.f32.vlgmr.msra.gmra.mrb[0].mxu0 %vm416_vm0, %v389_v38 }
  0xa4   : > { %841 = vmatprep.mubr.msk.f32.mxu0 %vm416_vm0, %v390_v39 }
  0xa6   : > { %v530_v61 = vpop.permute.xlu1 %529  ;;  %v525_v62 = vpop.permute.xlu0 %524 }
  0xa7   : > { %842 = vmatmul.mubr.msk.f32.gmra.mrb[2].mxu0 %vm416_vm0, %v391_v40 }
  0xa8   : > { %866 = vmatprep.mubr.msk.f32.mxu0 %vm1002_vm1, %v1003_v60 }
  0xaa   : > { %v540_v3 = vpop.permute.xlu1 %539  ;;  %v535_v6 = vpop.permute.xlu0 %534 }
  0xae   : > { %v644_v12 = vpop.permute.xlu0 %643 }
 0x176   : > { %v840_v44 = vpop.f32.mrb[0].mxu0 }
 0x177   : > { %v501_v45 = vadd.f32 %v840_v44, %v404_v42  ;;  %v495_v46 = vpop.f32.mrb[1].mxu0 }
 0x178   : > { %v496_v47 = vadd.f32 %v495_v46, %v399_v43 }
 0x17a   : > { %v843_v49 = vpop.f32.mrb[2].mxu0  ;;  %v877_v50 = vpack.c.bf16 %v501_v45, %v496_v47 }
 0x17b   : > { %v511_v52 = vadd.f32 %v843_v49, %v414_v48  ;;  %v505_v53 = vpop.f32.mrb[3].mxu0 }
 0x17c   : > { %v506_v54 = vadd.f32 %v505_v53, %v409_v51  ;;  %878 = vmatprep.subr.bf16.mxu1 %v877_v50 }
 0x17d   : > { %880 = vmatpush3.bf16.msra.mxu1 %v877_v50 }
 0x17e   : > { %v881_v55 = vpack.c.bf16 %v511_v52, %v506_v54 }
 0x180   : > { %882 = vmatprep.subr.bf16.mxu1 %v881_v55 }
 0x181   : > { %884 = vmatpush3.bf16.msra.mxu1 %v881_v55 }
 0x184   : > { %853 = vmatmul.mubr.msk.f32.vlgmr.msra.gmra.mrb[0].mxu1 %vm416_vm0, %v515_v56 }
 0x185   : > { %855 = vmatprep.mubr.msk.f32.mxu1 %vm416_vm0, %v516_v57 }
 0x188   : > { %856 = vmatmul.mubr.msk.f32.gmra.mrb[2].mxu1 %vm416_vm0, %v517_v58 }
 0x257   : > { %v854_v63 = vpop.f32.mrb[0].mxu1 }
 0x258   : > { %v626_v0 = vadd.f32 %v854_v63, %v530_v61  ;;  %v620_v1 = vpop.f32.mrb[1].mxu1 }
 0x259   : > { %v621_v2 = vadd.f32 %v620_v1, %v525_v62 }
 0x25b   : > { %v886_v4 = vpack.c.bf16 %v626_v0, %v621_v2  ;;  %v857_v5 = vpop.f32.mrb[2].mxu1 }
 0x25c   : > { %v636_v7 = vadd.f32 %v857_v5, %v540_v3  ;;  %v630_v8 = vpop.f32.mrb[3].mxu1 }
 0x25d   : > { %v631_v9 = vadd.f32 %v630_v8, %v535_v6  ;;  %887 = vmatpush3.bf16.msra.mxu0 %v886_v4 }
 0x25e   : > { %888 = vmatprep.subr.bf16.mxu0 %v1001_v59 }
 0x25f   : > { %v889_v10 = vpack.c.bf16 %v636_v7, %v631_v9 }
 0x261   : > { %890 = vmatpush3.bf16.msra.mxu0 %v889_v10 }
 0x264   : > { %867 = vmatmul.mubr.msk.f32.vlgmr.msra.gmra.mrb[4].mxu0 %vm416_vm0, %v639_v11 }
 0x337   : > { %v715_v13 = vpop.f32.mrb[4].mxu0 }
 0x338   : > { %v716_v14 = vadd.f32 %v715_v13, %v644_v12  ;;  %v868_v15 = vpop.f32.mrb[5].mxu0 }
 0x33a   : > { %719 = vst [vmem:[%s321_s17] sm:$0xf] %v716_v14 }
 0x33b   : > { %949 = shalt.err (!%p946_p3)
}
 0x33c   : > { %s950_s29 = scalar_lea.hbm %s1200_s24, 64  ;;  %s954_s17 = scalar_lea.hbm %s1251_s9, 128 }
 0x33d   : > { %p951_p4 = scmp.ne.s32.totalorder %s1200_s24, %s950_s29  ;;  %p955_p9 = scmp.lt.u32.totalorder %s1200_s24, %s1251_s9 }
 0x33e   : > { %p956_p10 = scmp.lt.u32.totalorder %s954_s17, %s950_s29  ;;  %p958_p12 = scmp.lt.u32.totalorder %s950_s29, %s1200_s24 }
 0x33f   : > { %p952_p7 = pnand %p951_p4, %p1093_p5 }
 0x340   : > { %p957_p11 = por %p956_p10, %p955_p9 }
 0x341   : > { %p953_p8 = pneg %p952_p7 }
 0x342   : > { %p959_p13 = por %p958_p12, %p957_p11 }
 0x344   : > { %p960_p0 = pnand %p959_p13, %p953_p8 }
 0x346   : > { %963 = shalt.err (!%p960_p0)
}
 0x347   : > { %891 = dma.vmem_to_hbm [thread:$0]  (%p1093_p5), %s1202_s21, 64, %s1200_s24, %s721_s25  }
 0x348 PF: > { %p897_p1 = scmp.ge.s32.totalorder %s998_s12, 2  ;;  %s746_s26 = sand.u32 1, %s986_s30  }
 0x349   : > { %s747_s13 = scalar_lea.sflag [#allocation3], %s746_s26 }
 0x34a   : > { %p894_p2 = pnand %p897_p1, %p1097_p6 }
 0x34c   : > { %981 = dma.done.wait (!%p894_p2), %s747_s13, 64  }
 0x34d   : > { %983 = vsyncadd (!%p894_p2), %s747_s13, 4294967232  ;;  %p19_p3 = scmp.ge.s32.totalorder %s1080_s15, 4   ;;  %s1254_s30 = smov %s990_s10 }
 0x34e   : > { %s1255_s10 = smov %s994_s11  ;;  %s1256_s11 = smov %s1091_s18 }
 0x34f   : > { %s1257_s12 = smov %s1080_s15  ;;  %21 = sbr.rel (!%p19_p3) target bundleno = 3 (0x3), region = 91 }
 0x356   :  { %752 = vsyncpa [#allocation3], 1 }
 0x357   :  { %754 = vsyncpa [#allocation3 + $0x1], 1 }

</bundles_post_ra>
